<compile_context>
chip_gen: v7x
topology: tpu7x:2x2x1
jax: 0.10.0
libtpu: 0.0.40
codegen_flags: <defaults>
</compile_context>

<pallas_src>
import functools

import jax
import jax.numpy as jnp
from jax.experimental import pallas as pl
from jax.experimental.pallas import tpu as pltpu


def _round_up(x, m):
    return ((x + m - 1) // m) * m


def _hist_matmul(ids, fused_ref, n_rows, chunk, acc):
    """acc += token_count_histogram(ids)[:, :n_rows] @ fused_ref[:n_rows, :].

    The (BT, n_rows) histogram is never materialized whole: it is built
    `chunk` vocab columns at a time with pure VPU compare-adds against one
    lane iota, then fed to the MXU as a (BT, chunk) bf16 operand.  This caps
    vreg pressure (bt=128, chunk=256, f32 -> 128 KiB) regardless of tile size.
    """
    BT, S = ids.shape
    base = jax.lax.broadcasted_iota(jnp.int32, (BT, chunk), 1)
    for c in range(n_rows // chunk):
        ids_c = ids - c * chunk          # offset the (BT,S) ids, not the big iota
        counts = jnp.zeros((BT, chunk), jnp.float32)
        # S is small & static here (demo S=8).
        # TODO(synk): for very long sequences switch to
        # lax.fori_loop(..., unroll=8) to bound code size / spill pressure.
        for s in range(S):
            counts = counts + (ids_c[:, s:s + 1] == base).astype(jnp.float32)
        acc = acc + jnp.dot(counts.astype(fused_ref.dtype),
                            fused_ref[pl.ds(c * chunk, chunk), :],
                            preferred_element_type=jnp.float32)
    return acc


def _finalize(acc, inv_s):
    proj = acc * inv_s                                    # mean-pool scale
    inv_norm = jax.lax.rsqrt(
        jnp.sum(proj * proj, axis=-1, keepdims=True) + 1e-12)
    return proj * inv_norm                                # L2 normalize


def _encode_resident_kernel(tok_ref, fused_ref, out_ref, *, chunk, inv_s):
    # Whole fused (V,E) table is VMEM-resident (constant index_map): no vocab
    # grid axis, no accumulator scratch, no init/finalize branches.
    ids = tok_ref[...]                                    # (BT, S) int32
    BT = ids.shape[0]
    v_rows, E = fused_ref.shape
    acc = _hist_matmul(ids, fused_ref, v_rows, chunk,
                       jnp.zeros((BT, E), jnp.float32))
    out_ref[...] = _finalize(acc, inv_s)


def _encode_vtiled_kernel(tok_ref, fused_ref, out_ref, *, chunk, inv_s):
    # Fused table streamed in (vt, E) tiles along the trailing "arbitrary"
    # grid axis.  The f32 output block index is constant across it, so the
    # output itself is the VMEM-resident accumulator (no scratch buffer).
    v = pl.program_id(1)
    n_v = pl.num_programs(1)

    @pl.when(v == 0)
    def _():
        out_ref[...] = jnp.zeros_like(out_ref)

    ids = tok_ref[...]                                    # (BT, S) int32
    vt = fused_ref.shape[0]
    ids = ids - v * vt                                    # shift ids into this tile
    out_ref[...] = _hist_matmul(ids, fused_ref, vt, chunk, out_ref[...])

    @pl.when(v == n_v - 1)
    def _():
        out_ref[...] = _finalize(out_ref[...], inv_s)


def make_encoder(emb_table, proj_w, proj_b, *, bt=128, vt=None, chunk=256,
                 mxu_dtype=jnp.bfloat16,
                 resident_table_budget=6 * 1024 * 1024):
    """Build `encode(tokens) -> (B, E)` with the fused table precomputed once."""
    V, H = emb_table.shape
    E = proj_w.shape[1]
    assert E % 128 == 0, "E must be lane-dense (multiple of 128)"

    # Algebraic fusion: (counts @ emb) @ W + b == counts @ (emb @ W + b),
    # because sum_v counts[b, v] == S.  Computed ONCE per model (hoisted out
    # of the encode path), f32 accumulation then cast for the MXU.
    fused = (emb_table.astype(jnp.float32) @ proj_w.astype(jnp.float32)
             + proj_b.astype(jnp.float32)[None, :]).astype(mxu_dtype)

    el_bytes = jnp.dtype(mxu_dtype).itemsize
    if vt is None and V * E * el_bytes <= resident_table_budget:
        vt_eff = None                                     # table stays VMEM-resident
        v_pad = _round_up(V, chunk)
    else:
        if vt is None:
            # ~2 MiB tiles (double-buffered ~4 MiB): conservative under v7x's
            # 32 MiB default scoped VMEM, big enough to be HBM-bw bound.
            vt = max(chunk, ((2 * 1024 * 1024) // (E * el_bytes)) // chunk * chunk)
        vt_eff = min(_round_up(vt, chunk), _round_up(V, chunk))
        v_pad = _round_up(V, vt_eff)
    if v_pad != V:
        # Zero-padded vocab rows: no token id maps there, contribute nothing.
        fused = jnp.pad(fused, ((0, v_pad - V), (0, 0)))
    chunk_eff = min(chunk, v_pad if vt_eff is None else vt_eff)

    def encode(tokens):
        B, S = tokens.shape
        # Large batch tiles (>=128 ideally) amortize per-step overhead and fill
        # the MXU rows; clamp for tiny batches to avoid massive padding.  With
        # B >= 2*bt the "parallel" batch axis keeps both v7x TensorCores busy.
        bt_eff = min(bt, _round_up(B, 8))
        b_pad = _round_up(B, bt_eff)
        if b_pad != B:
            tokens = jnp.pad(tokens, ((0, b_pad - B), (0, 0)))

        if vt_eff is None:
            kernel = functools.partial(_encode_resident_kernel,
                                       chunk=chunk_eff, inv_s=1.0 / S)
            grid = (b_pad // bt_eff,)
            in_specs = [pl.BlockSpec((bt_eff, S), lambda b: (b, 0)),
                        pl.BlockSpec((v_pad, E), lambda b: (0, 0))]
            out_spec = pl.BlockSpec((bt_eff, E), lambda b: (b, 0))
            dims = ("parallel",)
        else:
            kernel = functools.partial(_encode_vtiled_kernel,
                                       chunk=chunk_eff, inv_s=1.0 / S)
            grid = (b_pad // bt_eff, v_pad // vt_eff)     # reduction axis last
            in_specs = [pl.BlockSpec((bt_eff, S), lambda b, v: (b, 0)),
                        pl.BlockSpec((vt_eff, E), lambda b, v: (v, 0))]
            out_spec = pl.BlockSpec((bt_eff, E), lambda b, v: (b, 0))
            dims = ("parallel", "arbitrary")

        out = pl.pallas_call(
            kernel,
            out_shape=jax.ShapeDtypeStruct((b_pad, E), jnp.float32),
            grid_spec=pltpu.PrefetchScalarGridSpec(
                num_scalar_prefetch=0, grid=grid,
                in_specs=in_specs, out_specs=out_spec),
            compiler_params=pltpu.CompilerParams(dimension_semantics=dims),
        )(tokens, fused)
        return out[:B]

    return encode


def reference_encode(tokens, emb_table, proj_w, proj_b):
    # Pure-JAX f32 reference of the same synthetic encoder.
    gathered = jnp.take(emb_table, tokens, axis=0)        # (B, S, H)
    pooled = jnp.mean(gathered, axis=1)                   # (B, H)
    proj = pooled @ proj_w + proj_b                       # (B, E)
    return proj / jnp.sqrt(jnp.sum(proj * proj, axis=-1, keepdims=True) + 1e-12)


if __name__ == "__main__":
    # Small, TPU-friendly synthetic sizes (logical batch of 2 "texts").
    B, S = 2, 8
    V, H, E = 512, 128, 128

    key = jax.random.PRNGKey(0)
    k_tok, k_emb, k_w, k_b = jax.random.split(key, 4)

    tokens = jax.random.randint(k_tok, (B, S), 0, V, dtype=jnp.int32)
    emb_table = jax.random.normal(k_emb, (V, H), dtype=jnp.float32) * 0.1
    proj_w = jax.random.normal(k_w, (H, E), dtype=jnp.float32) * 0.05
    proj_b = jax.random.normal(k_b, (E,), dtype=jnp.float32) * 0.01

    ref = reference_encode(tokens, emb_table, proj_w, proj_b)

    # Path 1: fused table fully VMEM-resident (no vocab grid axis).
    encode = make_encoder(emb_table, proj_w, proj_b)
    out = jax.block_until_ready(encode(tokens))
    assert out.shape == (B, E)
    # Tolerance accounts for bf16 MXU operands (fused table + counts cast).
    assert jnp.allclose(out, ref, atol=1e-2, rtol=1e-2), "resident path mismatch"

    # Path 2: force the V-tiled reduction path (exercises accumulate-into-out).
    encode_tiled = make_encoder(emb_table, proj_w, proj_b, vt=256)
    out2 = jax.block_until_ready(encode_tiled(tokens))
    assert jnp.allclose(out2, ref, atol=1e-2, rtol=1e-2), "tiled path mismatch"

    print("KERNEL_OK")
</pallas_src>

<mosaic_0001>
module attributes {stable_mosaic.version = 11 : i64} {
  func.func @_encode_resident_kernel(%arg0: i32, %arg1: memref<8x8xi32, #tpu.memory_space<vmem>>, %arg2: memref<512x128xbf16, #tpu.memory_space<vmem>>, %arg3: memref<8x128xf32, #tpu.memory_space<vmem>>) attributes {dimension_semantics = [#tpu.dimension_semantics<parallel>], iteration_bounds = array<i64: 1>, scalar_prefetch = 0 : i64, scratch_operands = 0 : i64, tpu.core_type = #tpu.core_type<tc>, window_params = [{transform_indices = @transform_0, window_bounds = array<i64: 8, 8>}, {pipeline_mode = #tpu.pipeline_mode<synchronous>, transform_indices = @transform_1, window_bounds = array<i64: 512, 128>}, {transform_indices = @transform_2, window_bounds = array<i64: 8, 128>}]} {
    %c0 = arith.constant 0 : index
    %c0_0 = arith.constant 0 : index
    %0 = vector.load %arg1[%c0, %c0_0] : memref<8x8xi32, #tpu.memory_space<vmem>>, vector<8x8xi32>
    %cst = arith.constant 0.000000e+00 : f32
    %1 = vector.broadcast %cst : f32 to vector<8x128xf32>
    %2 = tpu.iota {dimensions = array<i32: 1>} : vector<8x256xi32>
    %c0_i32 = arith.constant 0 : i32
    %3 = vector.broadcast %c0_i32 : i32 to vector<8x8xi32>
    %4 = arith.subi %0, %3 : vector<8x8xi32>
    %cst_1 = arith.constant 0.000000e+00 : f32
    %5 = vector.broadcast %cst_1 : f32 to vector<8x256xf32>
    %6 = vector.extract_strided_slice %4 {offsets = [0, 0], sizes = [8, 1], strides = [1, 1]} : vector<8x8xi32> to vector<8x1xi32>
    %7 = vector.broadcast %6 : vector<8x1xi32> to vector<8x256xi32>
    %8 = arith.cmpi eq, %7, %2 : vector<8x256xi32>
    %9 = arith.extui %8 : vector<8x256xi1> to vector<8x256xi32>
    %10 = arith.sitofp %9 : vector<8x256xi32> to vector<8x256xf32>
    %11 = arith.addf %5, %10 : vector<8x256xf32>
    %12 = vector.extract_strided_slice %4 {offsets = [0, 1], sizes = [8, 1], strides = [1, 1]} : vector<8x8xi32> to vector<8x1xi32>
    %13 = vector.broadcast %12 : vector<8x1xi32> to vector<8x256xi32>
    %14 = arith.cmpi eq, %13, %2 : vector<8x256xi32>
    %15 = arith.extui %14 : vector<8x256xi1> to vector<8x256xi32>
    %16 = arith.sitofp %15 : vector<8x256xi32> to vector<8x256xf32>
    %17 = arith.addf %11, %16 : vector<8x256xf32>
    %18 = vector.extract_strided_slice %4 {offsets = [0, 2], sizes = [8, 1], strides = [1, 1]} : vector<8x8xi32> to vector<8x1xi32>
    %19 = vector.broadcast %18 : vector<8x1xi32> to vector<8x256xi32>
    %20 = arith.cmpi eq, %19, %2 : vector<8x256xi32>
    %21 = arith.extui %20 : vector<8x256xi1> to vector<8x256xi32>
    %22 = arith.sitofp %21 : vector<8x256xi32> to vector<8x256xf32>
    %23 = arith.addf %17, %22 : vector<8x256xf32>
    %24 = vector.extract_strided_slice %4 {offsets = [0, 3], sizes = [8, 1], strides = [1, 1]} : vector<8x8xi32> to vector<8x1xi32>
    %25 = vector.broadcast %24 : vector<8x1xi32> to vector<8x256xi32>
    %26 = arith.cmpi eq, %25, %2 : vector<8x256xi32>
    %27 = arith.extui %26 : vector<8x256xi1> to vector<8x256xi32>
    %28 = arith.sitofp %27 : vector<8x256xi32> to vector<8x256xf32>
    %29 = arith.addf %23, %28 : vector<8x256xf32>
    %30 = vector.extract_strided_slice %4 {offsets = [0, 4], sizes = [8, 1], strides = [1, 1]} : vector<8x8xi32> to vector<8x1xi32>
    %31 = vector.broadcast %30 : vector<8x1xi32> to vector<8x256xi32>
    %32 = arith.cmpi eq, %31, %2 : vector<8x256xi32>
    %33 = arith.extui %32 : vector<8x256xi1> to vector<8x256xi32>
    %34 = arith.sitofp %33 : vector<8x256xi32> to vector<8x256xf32>
    %35 = arith.addf %29, %34 : vector<8x256xf32>
    %36 = vector.extract_strided_slice %4 {offsets = [0, 5], sizes = [8, 1], strides = [1, 1]} : vector<8x8xi32> to vector<8x1xi32>
    %37 = vector.broadcast %36 : vector<8x1xi32> to vector<8x256xi32>
    %38 = arith.cmpi eq, %37, %2 : vector<8x256xi32>
    %39 = arith.extui %38 : vector<8x256xi1> to vector<8x256xi32>
    %40 = arith.sitofp %39 : vector<8x256xi32> to vector<8x256xf32>
    %41 = arith.addf %35, %40 : vector<8x256xf32>
    %42 = vector.extract_strided_slice %4 {offsets = [0, 6], sizes = [8, 1], strides = [1, 1]} : vector<8x8xi32> to vector<8x1xi32>
    %43 = vector.broadcast %42 : vector<8x1xi32> to vector<8x256xi32>
    %44 = arith.cmpi eq, %43, %2 : vector<8x256xi32>
    %45 = arith.extui %44 : vector<8x256xi1> to vector<8x256xi32>
    %46 = arith.sitofp %45 : vector<8x256xi32> to vector<8x256xf32>
    %47 = arith.addf %41, %46 : vector<8x256xf32>
    %48 = vector.extract_strided_slice %4 {offsets = [0, 7], sizes = [8, 1], strides = [1, 1]} : vector<8x8xi32> to vector<8x1xi32>
    %49 = vector.broadcast %48 : vector<8x1xi32> to vector<8x256xi32>
    %50 = arith.cmpi eq, %49, %2 : vector<8x256xi32>
    %51 = arith.extui %50 : vector<8x256xi1> to vector<8x256xi32>
    %52 = arith.sitofp %51 : vector<8x256xi32> to vector<8x256xf32>
    %53 = arith.addf %47, %52 : vector<8x256xf32>
    %54 = arith.truncf %53 : vector<8x256xf32> to vector<8x256xbf16>
    %c0_2 = arith.constant 0 : index
    %c0_3 = arith.constant 0 : index
    %55 = vector.load %arg2[%c0_2, %c0_3] : memref<512x128xbf16, #tpu.memory_space<vmem>>, vector<256x128xbf16>
    %cst_4 = arith.constant dense<0.000000e+00> : vector<8x128xf32>
    %56 = tpu.matmul %54, %55, %cst_4 {dimension_numbers = #tpu.dot_dimension_numbers<[1], [0], [0], [1], [0, 0, 1, 1], [], []>} : vector<8x256xbf16>, vector<256x128xbf16>, vector<8x128xf32> -> vector<8x128xf32>
    %57 = arith.addf %1, %56 : vector<8x128xf32>
    %c256_i32 = arith.constant 256 : i32
    %58 = vector.broadcast %c256_i32 : i32 to vector<8x8xi32>
    %59 = arith.subi %0, %58 : vector<8x8xi32>
    %cst_5 = arith.constant 0.000000e+00 : f32
    %60 = vector.broadcast %cst_5 : f32 to vector<8x256xf32>
    %61 = vector.extract_strided_slice %59 {offsets = [0, 0], sizes = [8, 1], strides = [1, 1]} : vector<8x8xi32> to vector<8x1xi32>
    %62 = vector.broadcast %61 : vector<8x1xi32> to vector<8x256xi32>
    %63 = arith.cmpi eq, %62, %2 : vector<8x256xi32>
    %64 = arith.extui %63 : vector<8x256xi1> to vector<8x256xi32>
    %65 = arith.sitofp %64 : vector<8x256xi32> to vector<8x256xf32>
    %66 = arith.addf %60, %65 : vector<8x256xf32>
    %67 = vector.extract_strided_slice %59 {offsets = [0, 1], sizes = [8, 1], strides = [1, 1]} : vector<8x8xi32> to vector<8x1xi32>
    %68 = vector.broadcast %67 : vector<8x1xi32> to vector<8x256xi32>
    %69 = arith.cmpi eq, %68, %2 : vector<8x256xi32>
    %70 = arith.extui %69 : vector<8x256xi1> to vector<8x256xi32>
    %71 = arith.sitofp %70 : vector<8x256xi32> to vector<8x256xf32>
    %72 = arith.addf %66, %71 : vector<8x256xf32>
    %73 = vector.extract_strided_slice %59 {offsets = [0, 2], sizes = [8, 1], strides = [1, 1]} : vector<8x8xi32> to vector<8x1xi32>
    %74 = vector.broadcast %73 : vector<8x1xi32> to vector<8x256xi32>
    %75 = arith.cmpi eq, %74, %2 : vector<8x256xi32>
    %76 = arith.extui %75 : vector<8x256xi1> to vector<8x256xi32>
    %77 = arith.sitofp %76 : vector<8x256xi32> to vector<8x256xf32>
    %78 = arith.addf %72, %77 : vector<8x256xf32>
    %79 = vector.extract_strided_slice %59 {offsets = [0, 3], sizes = [8, 1], strides = [1, 1]} : vector<8x8xi32> to vector<8x1xi32>
    %80 = vector.broadcast %79 : vector<8x1xi32> to vector<8x256xi32>
    %81 = arith.cmpi eq, %80, %2 : vector<8x256xi32>
    %82 = arith.extui %81 : vector<8x256xi1> to vector<8x256xi32>
    %83 = arith.sitofp %82 : vector<8x256xi32> to vector<8x256xf32>
    %84 = arith.addf %78, %83 : vector<8x256xf32>
    %85 = vector.extract_strided_slice %59 {offsets = [0, 4], sizes = [8, 1], strides = [1, 1]} : vector<8x8xi32> to vector<8x1xi32>
    %86 = vector.broadcast %85 : vector<8x1xi32> to vector<8x256xi32>
    %87 = arith.cmpi eq, %86, %2 : vector<8x256xi32>
    %88 = arith.extui %87 : vector<8x256xi1> to vector<8x256xi32>
    %89 = arith.sitofp %88 : vector<8x256xi32> to vector<8x256xf32>
    %90 = arith.addf %84, %89 : vector<8x256xf32>
    %91 = vector.extract_strided_slice %59 {offsets = [0, 5], sizes = [8, 1], strides = [1, 1]} : vector<8x8xi32> to vector<8x1xi32>
    %92 = vector.broadcast %91 : vector<8x1xi32> to vector<8x256xi32>
    %93 = arith.cmpi eq, %92, %2 : vector<8x256xi32>
    %94 = arith.extui %93 : vector<8x256xi1> to vector<8x256xi32>
    %95 = arith.sitofp %94 : vector<8x256xi32> to vector<8x256xf32>
    %96 = arith.addf %90, %95 : vector<8x256xf32>
    %97 = vector.extract_strided_slice %59 {offsets = [0, 6], sizes = [8, 1], strides = [1, 1]} : vector<8x8xi32> to vector<8x1xi32>
    %98 = vector.broadcast %97 : vector<8x1xi32> to vector<8x256xi32>
    %99 = arith.cmpi eq, %98, %2 : vector<8x256xi32>
    %100 = arith.extui %99 : vector<8x256xi1> to vector<8x256xi32>
    %101 = arith.sitofp %100 : vector<8x256xi32> to vector<8x256xf32>
    %102 = arith.addf %96, %101 : vector<8x256xf32>
    %103 = vector.extract_strided_slice %59 {offsets = [0, 7], sizes = [8, 1], strides = [1, 1]} : vector<8x8xi32> to vector<8x1xi32>
    %104 = vector.broadcast %103 : vector<8x1xi32> to vector<8x256xi32>
    %105 = arith.cmpi eq, %104, %2 : vector<8x256xi32>
    %106 = arith.extui %105 : vector<8x256xi1> to vector<8x256xi32>
    %107 = arith.sitofp %106 : vector<8x256xi32> to vector<8x256xf32>
    %108 = arith.addf %102, %107 : vector<8x256xf32>
    %109 = arith.truncf %108 : vector<8x256xf32> to vector<8x256xbf16>
    %c256 = arith.constant 256 : index
    %c0_6 = arith.constant 0 : index
    %110 = vector.load %arg2[%c256, %c0_6] : memref<512x128xbf16, #tpu.memory_space<vmem>>, vector<256x128xbf16>
    %cst_7 = arith.constant dense<0.000000e+00> : vector<8x128xf32>
    %111 = tpu.matmul %109, %110, %cst_7 {dimension_numbers = #tpu.dot_dimension_numbers<[1], [0], [0], [1], [0, 0, 1, 1], [], []>} : vector<8x256xbf16>, vector<256x128xbf16>, vector<8x128xf32> -> vector<8x128xf32>
    %112 = arith.addf %57, %111 : vector<8x128xf32>
    %cst_8 = arith.constant 1.250000e-01 : f32
    %113 = vector.broadcast %cst_8 : f32 to vector<8x128xf32>
    %114 = arith.mulf %112, %113 : vector<8x128xf32>
    %115 = arith.mulf %114, %114 : vector<8x128xf32>
    %cst_9 = arith.constant dense<0.000000e+00> : vector<8xf32>
    %116 = vector.multi_reduction <add>, %115, %cst_9 [1] : vector<8x128xf32> to vector<8xf32>
    %117 = vector.shape_cast %116 : vector<8xf32> to vector<8x1xf32>
    %cst_10 = arith.constant 9.99999996E-13 : f32
    %118 = vector.broadcast %cst_10 : f32 to vector<8x1xf32>
    %119 = arith.addf %117, %118 : vector<8x1xf32>
    %120 = math.rsqrt %119 : vector<8x1xf32>
    %121 = vector.broadcast %120 : vector<8x1xf32> to vector<8x128xf32>
    %122 = arith.mulf %114, %121 : vector<8x128xf32>
    %c0_11 = arith.constant 0 : index
    %c0_12 = arith.constant 0 : index
    %123 = vector.load %arg3[%c0_11, %c0_12] : memref<8x128xf32, #tpu.memory_space<vmem>>, vector<8x128xf32>
    tpu.vector_store %arg3[%c0_11, %c0_12], %122 {strides = array<i32>} : memref<8x128xf32, #tpu.memory_space<vmem>>, vector<8x128xf32>,
    return
  }
  func.func @transform_0(%arg0: i32) -> (i32, i32) {
    %c0_i32 = arith.constant 0 : i32
    %c0_i32_0 = arith.constant 0 : i32
    return %arg0, %c0_i32 : i32, i32
  }
  func.func @transform_1(%arg0: i32) -> (i32, i32) {
    %c0_i32 = arith.constant 0 : i32
    %c0_i32_0 = arith.constant 0 : i32
    %c0_i32_1 = arith.constant 0 : i32
    return %c0_i32, %c0_i32_0 : i32, i32
  }
  func.func @transform_2(%arg0: i32) -> (i32, i32) {
    %c0_i32 = arith.constant 0 : i32
    %c0_i32_0 = arith.constant 0 : i32
    return %arg0, %c0_i32 : i32, i32
  }
}

</mosaic_0001>

<bundles_post_ra>
// kernel: tpu_custom_call.1
= control target key start
LH: loop header
LB: loop body
LE: loop exit
PB: predicated region body
PF: predicated region fallthrough
CT: control target
= control target key end

     0   :  { %7 = vsyncpa [#allocation3], 0  ;;  %s993_s0 = inlined_call_operand.hbm [shape: s32[8,8], index: 0, kind: input, shape index: {}]   ;;  %s994_s1 = inlined_call_operand.hbm [shape: bf16[512,128], index: 1, kind: input, shape index: {}]   ;;  %s995_s2 = inlined_call_operand.hbm [shape: f32[8,128], index: 2, kind: output, shape index: {}]  }
   0x1   :  { %8 = vsyncpa [#allocation6], 0 }
   0x2   :  { %9 = vsyncpa [#allocation4], 0  ;;  %s827_s9 = smov [#allocation2]   ;;  %s828_s11 = smov [#allocation5]  }
   0x3   :  { %s16_s10 = sshll.u32 %s827_s9, 4  ;;  %s25_s12 = sshll.u32 %s828_s11, 4  ;;  %s17_s10 = int_to_ptr.vmem [resolvable:$true] %s16_s10  ;;  %s856_s12 = int_to_ptr.vmem [resolvable:$true] %s25_s12 }
   0x4   :  { %s755_s15 = scalar_lea.hbm %s993_s0, 128 }
   0x5   :  { %p756_p0 = scmp.ne.s32.totalorder %s993_s0, %s755_s15  ;;  %p759_p1 = scmp.lt.u32.totalorder %s755_s15, %s993_s0 }
   0x7   :  { %p761_p2 = pnand %p759_p1, %p756_p0 }
   0x9   :  { %764 = shalt.err (!%p761_p2)
}
   0xa   :  { %s765_s20 = scalar_lea.vmem %s17_s10, 128  ;;  %p770_p4 = scmp.lt.s32.totalorder %s17_s10, %s17_s10 }
   0xb   :  { %p766_p3 = scmp.ne.s32.totalorder %s17_s10, %s765_s20  ;;  %p771_p5 = scmp.lt.s32.totalorder %s765_s20, %s765_s20 }
   0xd   :  { %p772_p6 = por %p771_p5, %p770_p4 }
   0xf   :  { %p773_p7 = pnand %p772_p6, %p766_p3 }
  0x11   :  { %776 = shalt.err (!%p773_p7)
}
  0x12   :  { %19 = dma.hbm_to_vmem [thread:$0]  %s993_s0, 128, %s17_s10, [#allocation3]  }
  0x13   :  { %s777_s25 = scalar_lea.hbm %s994_s1, 4096 }
  0x14   :  { %p778_p8 = scmp.ne.s32.totalorder %s994_s1, %s777_s25  ;;  %p781_p9 = scmp.lt.u32.totalorder %s777_s25, %s994_s1 }
  0x16   :  { %p783_p10 = pnand %p781_p9, %p778_p8 }
  0x18   :  { %786 = shalt.err (!%p783_p10)
}
  0x19   :  { %s787_s30 = scalar_lea.vmem %s856_s12, 4096  ;;  %p792_p12 = scmp.lt.s32.totalorder %s856_s12, %s856_s12 }
  0x1a   :  { %p788_p11 = scmp.ne.s32.totalorder %s856_s12, %s787_s30  ;;  %p793_p13 = scmp.lt.s32.totalorder %s787_s30, %s787_s30 }
  0x1c   :  { %p794_p0 = por %p793_p13, %p792_p12 }
  0x1e   :  { %p795_p1 = pnand %p794_p0, %p788_p11 }
  0x20   :  { %798 = shalt.err (!%p795_p1)
}
  0x21   :  { %s829_s0 = smov 64   ;;  %s830_s3 = smov 4  }
  0x22   :  { %31 = dma.hbm_to_vmem [thread:$0]  %s994_s1, 4096, %s856_s12, [#allocation6], %s829_s0, %s829_s0, %s830_s3  }
  0x23   :  { %821 = dma.done.wait [#allocation3], 128  }
  0x24   :  { %822 = vsyncadd [#allocation3], 4294967168 }
  0x25   :  { %823 = dma.done.wait [#allocation6], 4096  }
  0x26   :  { %824 = vsyncadd [#allocation6], 4294963200  ;;  %v831_v0 = vmov 2   ;;  %v832_v1 = vmov 0   ;;  %v887_v2 = vld [vmem:[#allocation2] sm:$0xff]  ;;  %v833_v4 = vmov 1   ;;  %v40_v43 = vlaneseq }
  0x27   :  { %709 = vset.pattern.permute.xlu1 %v831_v0  ;;  %707 = vset.pattern.permute.xlu0 %v832_v1  ;;  %v892_v3 = vadd.s32 4294967040, %v887_v2  ;;  %v721_v5 = vld [vmem:[#allocation5 + $0x40] sm:$0xff]   ;;  %v723_v7 = vld [vmem:[#allocation5 + $0x48] sm:$0xff]   ;;  %v834_v8 = vmov 3   ;;  %v835_v9 = vmov 4   ;;  %v727_v13 = vld [vmem:[#allocation5 + $0x50] sm:$0xff]  }
  0x28   :  { %66 = vperm.xlu1 %709, %v887_v2   ;;  %44 = vperm.xlu0 %707, %v887_v2   ;;  %v722_v6 = vld [vmem:[#allocation5] sm:$0xff]   ;;  %v724_v10 = vld [vmem:[#allocation5 + $0x8] sm:$0xff]   ;;  %v728_v14 = vld [vmem:[#allocation5 + $0x10] sm:$0xff]   ;;  %v836_v15 = vmov 5   ;;  %v837_v20 = vmov 7   ;;  %v838_v30 = vmov 6  }
  0x29   :  { %671 = vmatprep.subr.bf16.mxu1 %v721_v5  ;;  %v725_v11 = vld [vmem:[#allocation5 + $0xc0] sm:$0xff]   ;;  %v729_v16 = vld [vmem:[#allocation5 + $0xc8] sm:$0xff]   ;;  %v731_v18 = vld [vmem:[#allocation5 + $0x58] sm:$0xff]   ;;  %v908_v46 = vand.u32 127, %v40_v43  ;;  %v839_v52 = vmov 0.0   ;;  %s840_s1 = smov [#allocation7]  }
  0x2a   :  { %672 = vmatpush3.bf16.msra.mxu1 %v722_v6  ;;  %v726_v12 = vld [vmem:[#allocation5 + $0x80] sm:$0xff]   ;;  %649 = vmatprep.subr.bf16.mxu0 %v725_v11  ;;  %v730_v17 = vld [vmem:[#allocation5 + $0x88] sm:$0xff]   ;;  %v732_v19 = vld [vmem:[#allocation5 + $0x18] sm:$0xff]   ;;  %s574_s6 = sshll.u32 %s840_s1, 4  ;;  %s575_s6 = int_to_ptr.vmem [resolvable:$true] %s574_s6 }
  0x2b   :  { %673 = vmatprep.subr.bf16.mxu1 %v723_v7  ;;  %650 = vmatpush3.bf16.msra.mxu0 %v726_v12  ;;  %v733_v21 = vld [vmem:[#allocation5 + $0xd0] sm:$0xff]   ;;  %v735_v23 = vld [vmem:[#allocation5 + $0x60] sm:$0xff]   ;;  %v737_v25 = vld [vmem:[#allocation5 + $0xd8] sm:$0xff]   ;;  %v911_v49 = vadd.s32 128, %v908_v46  ;;  %s799_s7 = scalar_lea.vmem %s575_s6, 128  ;;  %p804_p3 = scmp.lt.s32.totalorder %s575_s6, %s575_s6 }
  0x2c   :  { %710 = vset.pattern.permute.xlu1 %v832_v1  ;;  %708 = vset.pattern.permute.xlu0 %v833_v4  ;;  %v734_v22 = vld [vmem:[#allocation5 + $0x90] sm:$0xff]   ;;  %v736_v24 = vld [vmem:[#allocation5 + $0x20] sm:$0xff]   ;;  %v738_v26 = vld [vmem:[#allocation5 + $0x98] sm:$0xff]   ;;  %p800_p2 = scmp.ne.s32.totalorder %s575_s6, %s799_s7  ;;  %p805_p4 = scmp.lt.s32.totalorder %s799_s7, %s799_s7 }
  0x2d   :  { %55 = vperm.xlu0 %708, %v887_v2   ;;  %167 = vperm.xlu1 %710, %v892_v3   ;;  %v739_v27 = vld [vmem:[#allocation5 + $0x68] sm:$0xff]   ;;  %v741_v29 = vld [vmem:[#allocation5 + $0xe0] sm:$0xff]   ;;  %v743_v32 = vld [vmem:[#allocation5 + $0x70] sm:$0xff]  }
  0x2e   :  { %674 = vmatpush3.bf16.msra.mxu1 %v724_v10  ;;  %651 = vmatprep.subr.bf16.mxu0 %v729_v16  ;;  %v740_v28 = vld [vmem:[#allocation5 + $0x28] sm:$0xff]   ;;  %v742_v31 = vld [vmem:[#allocation5 + $0xa0] sm:$0xff]   ;;  %v744_v33 = vld [vmem:[#allocation5 + $0x30] sm:$0xff]   ;;  %p806_p5 = por %p805_p4, %p804_p3 }
  0x2f   :  { %675 = vmatprep.subr.bf16.mxu1 %v727_v13  ;;  %652 = vmatpush3.bf16.msra.mxu0 %v730_v17  ;;  %v745_v34 = vld [vmem:[#allocation5 + $0xe8] sm:$0xff]   ;;  %v747_v36 = vld [vmem:[#allocation5 + $0x78] sm:$0xff]   ;;  %v749_v38 = vld [vmem:[#allocation5 + $0xf0] sm:$0xff]  }
  0x30   :  { %653 = vmatprep.subr.bf16.mxu0 %v733_v21  ;;  %v746_v35 = vld [vmem:[#allocation5 + $0xa8] sm:$0xff]   ;;  %v748_v37 = vld [vmem:[#allocation5 + $0x38] sm:$0xff]   ;;  %v750_v39 = vld [vmem:[#allocation5 + $0xb0] sm:$0xff]   ;;  %p807_p6 = pnand %p806_p5, %p800_p2 }
  0x31   :  { %711 = vset.pattern.permute.xlu1 %v833_v4  ;;  %712 = vset.pattern.permute.xlu0 %v831_v0  ;;  %v751_v40 = vld [vmem:[#allocation5 + $0xf8] sm:$0xff]  }
  0x32   :  { %178 = vperm.xlu1 %711, %v892_v3   ;;  %189 = vperm.xlu0 %712, %v892_v3   ;;  %v752_v41 = vld [vmem:[#allocation5 + $0xb8] sm:$0xff]  }
  0x33   :  { %676 = vmatpush3.bf16.msra.mxu1 %v728_v14  ;;  %654 = vmatpush3.bf16.msra.mxu0 %v734_v22 }
  0x34   :  { %677 = vmatprep.subr.bf16.mxu1 %v731_v18  ;;  %655 = vmatprep.subr.bf16.mxu0 %v737_v25 }
  0x36   :  { %713 = vset.pattern.permute.xlu1 %v834_v8  ;;  %714 = vset.pattern.permute.xlu0 %v835_v9 }
  0x37   :  { %77 = vperm.xlu1 %713, %v887_v2   ;;  %88 = vperm.xlu0 %714, %v887_v2  }
  0x38   :  { %678 = vmatpush3.bf16.msra.mxu1 %v732_v19  ;;  %656 = vmatpush3.bf16.msra.mxu0 %v738_v26 }
  0x39   :  { %679 = vmatprep.subr.bf16.mxu1 %v735_v23  ;;  %657 = vmatprep.subr.bf16.mxu0 %v741_v29 }
  0x3b   :  { %200 = vperm.xlu1 %713, %v892_v3   ;;  %717 = vset.pattern.permute.xlu0 %v836_v15 }
  0x3c   :  { %222 = vperm.xlu0 %717, %v892_v3   ;;  %680 = vmatpush3.bf16.msra.mxu1 %v736_v24 }
  0x3d   :  { %681 = vmatprep.subr.bf16.mxu1 %v739_v27  ;;  %658 = vmatpush3.bf16.msra.mxu0 %v742_v31 }
  0x3e   :  { %659 = vmatprep.subr.bf16.mxu0 %v745_v34 }
  0x3f   :  { %715 = vset.pattern.permute.xlu1 %v835_v9 }
  0x40   :  { %211 = vperm.xlu1 %715, %v892_v3   ;;  %719 = vset.pattern.permute.xlu0 %v837_v20 }
  0x41   :  { %121 = vperm.xlu0 %719, %v887_v2   ;;  %682 = vmatpush3.bf16.msra.mxu1 %v740_v28 }
  0x42   :  { %683 = vmatprep.subr.bf16.mxu1 %v743_v32  ;;  %660 = vmatpush3.bf16.msra.mxu0 %v746_v35 }
  0x43   :  { %661 = vmatprep.subr.bf16.mxu0 %v749_v38 }
  0x44   :  { %716 = vset.pattern.permute.xlu1 %v836_v15 }
  0x45   :  { %99 = vperm.xlu1 %716, %v887_v2   ;;  %684 = vmatpush3.bf16.msra.mxu1 %v744_v33 }
  0x46   :  { %685 = vmatprep.subr.bf16.mxu1 %v747_v36  ;;  %662 = vmatpush3.bf16.msra.mxu0 %v750_v39 }
  0x47   :  { %663 = vmatprep.subr.bf16.mxu0 %v751_v40 }
  0x49   :  { %718 = vset.pattern.permute.xlu1 %v838_v30  ;;  %686 = vmatpush3.bf16.msra.mxu1 %v748_v37 }
  0x4a   :  { %110 = vperm.xlu1 %718, %v887_v2   ;;  %664 = vmatpush3.bf16.msra.mxu0 %v752_v41 }
  0x4e   :  { %233 = vperm.xlu1 %718, %v892_v3  }
  0x52   :  { %720 = vset.pattern.permute.xlu1 %v837_v20 }
  0x53   :  { %244 = vperm.xlu1 %720, %v892_v3  }
  0xa7   :  { %v67_v42 = vpop.permute.xlu1 %66  ;;  %v45_v45 = vpop.permute.xlu0 %44 }
  0xa8   :  { %vm46_vm0 = vcmp.eq.s32.totalorder %v45_v45, %v908_v46  ;;  %vm47_vm1 = vcmp.eq.s32.totalorder %v45_v45, %v911_v49  ;;  %vm68_vm4 = vcmp.eq.s32.totalorder %v67_v42, %v908_v46  ;;  %vm69_vm5 = vcmp.eq.s32.totalorder %v67_v42, %v911_v49 }
  0xa9   :  { %v584_v53 = vsel %vm46_vm0, 1.0, %v839_v52  ;;  %v585_v54 = vsel %vm47_vm1, 1.0, %v839_v52  ;;  %v588_v61 = vsel %vm68_vm4, 1.0, %v839_v52  ;;  %v589_v62 = vsel %vm69_vm5, 1.0, %v839_v52 }
  0xac   :  { %v168_v44 = vpop.permute.xlu1 %167  ;;  %v56_v48 = vpop.permute.xlu0 %55 }
  0xad   :  { %vm57_vm2 = vcmp.eq.s32.totalorder %v56_v48, %v908_v46  ;;  %vm58_vm3 = vcmp.eq.s32.totalorder %v56_v48, %v911_v49  ;;  %vm169_vm8 = vcmp.eq.s32.totalorder %v168_v44, %v908_v46  ;;  %vm170_vm9 = vcmp.eq.s32.totalorder %v168_v44, %v911_v49 }
  0xae   :  { %v586_v55 = vsel %vm57_vm2, 1.0, %v839_v52  ;;  %v587_v56 = vsel %vm58_vm3, 1.0, %v839_v52  ;;  %v601_v1 = vsel %vm169_vm8, 1.0, %v839_v52  ;;  %v602_v2 = vsel %vm170_vm9, 1.0, %v839_v52 }
  0xaf   :  { %v63_v58 = vadd.f32 %v586_v55, %v584_v53  ;;  %v64_v59 = vadd.f32 %v587_v56, %v585_v54 }
  0xb1   :  { %v179_v47 = vpop.permute.xlu1 %178  ;;  %v190_v51 = vpop.permute.xlu0 %189  ;;  %v74_v4 = vadd.f32 %v588_v61, %v63_v58  ;;  %v75_v5 = vadd.f32 %v589_v62, %v64_v59 }
  0xb2   :  { %vm180_vm6 = vcmp.eq.s32.totalorder %v179_v47, %v908_v46  ;;  %vm181_vm7 = vcmp.eq.s32.totalorder %v179_v47, %v911_v49  ;;  %vm191_vm12 = vcmp.eq.s32.totalorder %v190_v51, %v908_v46  ;;  %vm192_vm13 = vcmp.eq.s32.totalorder %v190_v51, %v911_v49 }
  0xb3   :  { %v603_v63 = vsel %vm180_vm6, 1.0, %v839_v52  ;;  %v604_v0 = vsel %vm181_vm7, 1.0, %v839_v52  ;;  %v605_v11 = vsel %vm191_vm12, 1.0, %v839_v52  ;;  %v606_v12 = vsel %vm192_vm13, 1.0, %v839_v52 }
  0xb4   :  { %v186_v8 = vadd.f32 %v603_v63, %v601_v1  ;;  %v187_v9 = vadd.f32 %v604_v0, %v602_v2 }
  0xb6   :  { %v78_v50 = vpop.permute.xlu1 %77  ;;  %v89_v60 = vpop.permute.xlu0 %88  ;;  %v197_v18 = vadd.f32 %v605_v11, %v186_v8  ;;  %v198_v19 = vadd.f32 %v606_v12, %v187_v9 }
  0xb7   :  { %vm79_vm10 = vcmp.eq.s32.totalorder %v78_v50, %v908_v46  ;;  %vm80_vm11 = vcmp.eq.s32.totalorder %v78_v50, %v911_v49  ;;  %vm90_vm14 = vcmp.eq.s32.totalorder %v89_v60, %v908_v46  ;;  %vm91_vm15 = vcmp.eq.s32.totalorder %v89_v60, %v911_v49 }
  0xb8   :  { %v590_v6 = vsel %vm79_vm10, 1.0, %v839_v52  ;;  %v591_v7 = vsel %vm80_vm11, 1.0, %v839_v52  ;;  %v592_v15 = vsel %vm90_vm14, 1.0, %v839_v52  ;;  %v593_v16 = vsel %vm91_vm15, 1.0, %v839_v52 }
  0xb9   :  { %v85_v13 = vadd.f32 %v590_v6, %v74_v4  ;;  %v86_v14 = vadd.f32 %v591_v7, %v75_v5 }
  0xba   :  { %v201_v57 = vpop.permute.xlu1 %200 }
  0xbb   :  { %v223_v10 = vpop.permute.xlu0 %222  ;;  %vm202_vm0 = vcmp.eq.s32.totalorder %v201_v57, %v908_v46  ;;  %vm203_vm1 = vcmp.eq.s32.totalorder %v201_v57, %v911_v49  ;;  %v96_v23 = vadd.f32 %v592_v15, %v85_v13  ;;  %v97_v24 = vadd.f32 %v593_v16, %v86_v14 }
  0xbc   :  { %v607_v21 = vsel %vm202_vm0, 1.0, %v839_v52  ;;  %v608_v22 = vsel %vm203_vm1, 1.0, %v839_v52  ;;  %vm224_vm6 = vcmp.eq.s32.totalorder %v223_v10, %v908_v46  ;;  %vm225_vm7 = vcmp.eq.s32.totalorder %v223_v10, %v911_v49 }
  0xbd   :  { %v208_v27 = vadd.f32 %v607_v21, %v197_v18  ;;  %v209_v28 = vadd.f32 %v608_v22, %v198_v19  ;;  %v611_v42 = vsel %vm224_vm6, 1.0, %v839_v52  ;;  %v612_v43 = vsel %vm225_vm7, 1.0, %v839_v52 }
  0xbf   :  { %v212_v3 = vpop.permute.xlu1 %211 }
  0xc0   :  { %v122_v20 = vpop.permute.xlu0 %121  ;;  %vm213_vm4 = vcmp.eq.s32.totalorder %v212_v3, %v908_v46  ;;  %vm214_vm5 = vcmp.eq.s32.totalorder %v212_v3, %v911_v49 }
  0xc1   :  { %vm123_vm8 = vcmp.eq.s32.totalorder %v122_v20, %v908_v46  ;;  %vm124_vm9 = vcmp.eq.s32.totalorder %v122_v20, %v911_v49  ;;  %v609_v29 = vsel %vm213_vm4, 1.0, %v839_v52  ;;  %v610_v30 = vsel %vm214_vm5, 1.0, %v839_v52 }
  0xc2   :  { %v598_v36 = vsel %vm123_vm8, 1.0, %v839_v52  ;;  %v599_v37 = vsel %vm124_vm9, 1.0, %v839_v52  ;;  %v219_v40 = vadd.f32 %v609_v29, %v208_v27  ;;  %v220_v41 = vadd.f32 %v610_v30, %v209_v28 }
  0xc4   :  { %v100_v17 = vpop.permute.xlu1 %99  ;;  %v230_v54 = vadd.f32 %v611_v42, %v219_v40  ;;  %v231_v55 = vadd.f32 %v612_v43, %v220_v41 }
  0xc5   :  { %vm101_vm2 = vcmp.eq.s32.totalorder %v100_v17, %v908_v46  ;;  %vm102_vm3 = vcmp.eq.s32.totalorder %v100_v17, %v911_v49 }
  0xc6   :  { %v594_v25 = vsel %vm101_vm2, 1.0, %v839_v52  ;;  %v595_v26 = vsel %vm102_vm3, 1.0, %v839_v52 }
  0xc7   :  { %v107_v32 = vadd.f32 %v594_v25, %v96_v23  ;;  %v108_v33 = vadd.f32 %v595_v26, %v97_v24 }
  0xc9   :  { %v111_v31 = vpop.permute.xlu1 %110 }
  0xca   :  { %vm112_vm10 = vcmp.eq.s32.totalorder %v111_v31, %v908_v46  ;;  %vm113_vm11 = vcmp.eq.s32.totalorder %v111_v31, %v911_v49 }
  0xcb   :  { %v596_v34 = vsel %vm112_vm10, 1.0, %v839_v52  ;;  %v597_v35 = vsel %vm113_vm11, 1.0, %v839_v52 }
  0xcc   :  { %v118_v38 = vadd.f32 %v596_v34, %v107_v32  ;;  %v119_v39 = vadd.f32 %v597_v35, %v108_v33 }
  0xcd   :  { %v234_v44 = vpop.permute.xlu1 %233 }
  0xce   :  { %v129_v45 = vadd.f32 %v598_v36, %v118_v38  ;;  %vm235_vm12 = vcmp.eq.s32.totalorder %v234_v44, %v908_v46  ;;  %vm236_vm13 = vcmp.eq.s32.totalorder %v234_v44, %v911_v49  ;;  %v130_v47 = vadd.f32 %v599_v37, %v119_v39 }
  0xcf   :  { %v613_v50 = vsel %vm235_vm12, 1.0, %v839_v52  ;;  %v614_v51 = vsel %vm236_vm13, 1.0, %v839_v52 }
  0xd0   :  { %v131_v48 = vpack.c.bf16 %v129_v45, %v129_v45  ;;  %v132_v53 = vpack.c.bf16 %v130_v47, %v130_v47  ;;  %v241_v57 = vadd.f32 %v613_v50, %v230_v54  ;;  %v242_v58 = vadd.f32 %v614_v51, %v231_v55 }
  0xd2   :  { %552 = vmatprep.mubr.bf16.mxu1 %v132_v53  ;;  %v245_v56 = vpop.permute.xlu1 %244 }
  0xd3   :  { %vm246_vm14 = vcmp.eq.s32.totalorder %v245_v56, %v908_v46  ;;  %vm247_vm15 = vcmp.eq.s32.totalorder %v245_v56, %v911_v49  ;;  %553 = vmatmul.mubr.bf16.vlgmr.msra.gmra.mrb[0].mxu1 %v131_v48 }
  0xd4   :  { %v615_v59 = vsel %vm246_vm14, 1.0, %v839_v52  ;;  %v616_v60 = vsel %vm247_vm15, 1.0, %v839_v52 }
  0xd5   :  { %v252_v61 = vadd.f32 %v615_v59, %v241_v57  ;;  %v253_v62 = vadd.f32 %v616_v60, %v242_v58 }
  0xd7   :  { %v255_v63 = vpack.c.bf16 %v253_v62, %v253_v62  ;;  %v254_v0 = vpack.c.bf16 %v252_v61, %v252_v61 }
  0xd9   :  { %416 = vmatprep.mubr.bf16.mxu0 %v255_v63 }
  0xda   :  { %417 = vmatmul.mubr.bf16.vlgmr.msra.gmra.mrb[0].mxu0 %v254_v0 }
 0x1a6   :  { %v687_v1 = vpop.f32.mrb[0].mxu1 }
 0x1a7   :  { %v688_v2 = vpop.f32.mrb[1].mxu1 }
 0x1a8   :  { %v689_v3 = vadd.f32 %v688_v2, %v687_v1  ;;  %v690_v4 = vpop.f32.mrb[2].mxu1 }
 0x1a9   :  { %v691_v5 = vpop.f32.mrb[3].mxu1 }
 0x1ad   :  { %v665_v46 = vpop.f32.mrb[0].mxu0 }
 0x1ae   :  { %v666_v6 = vpop.f32.mrb[1].mxu0 }
 0x1af   :  { %v667_v49 = vadd.f32 %v666_v6, %v665_v46  ;;  %v668_v7 = vpop.f32.mrb[2].mxu0 }
 0x1b0   :  { %v669_v8 = vpop.f32.mrb[3].mxu0 }
 0x1b1   :  { %v555_v9 = vadd.f32 %v689_v3, %v667_v49 }
 0x1b3   :  { %v560_v10 = vmul.f32 0.125, %v555_v9 }
 0x1b5   :  { %v561_v11 = vmul.f32 %v560_v10, %v560_v10 }
 0x1b7   :  { %562 = vadd.xlane.f32.xlu1 %v561_v11 }
 0x244   :  { %v563_v52 = vpop.xlane.xlu1 %562 }
 0x245   :  { %v564_v12 = vadd.f32 1e-12, %v563_v52 }
 0x247   :  { %753 = vrsqrt.f32 %v564_v12 }
 0x251   :  { %v754_v13 = vpop.eup %753 }
 0x252   :  { %v566_v14 = vmul.f32 %v754_v13, %v560_v10 }
 0x254   :  { %567 = vst [vmem:[#allocation7] sm:$0xff] %v566_v14 }
 0x255   :  { %810 = shalt.err (!%p807_p6)
}
 0x256   :  { %s811_s10 = scalar_lea.hbm %s995_s2, 128 }
 0x257   :  { %p812_p7 = scmp.ne.s32.totalorder %s995_s2, %s811_s10  ;;  %p815_p8 = scmp.lt.u32.totalorder %s811_s10, %s995_s2 }
 0x259   :  { %p817_p9 = pnand %p815_p8, %p812_p7 }
 0x25b   :  { %820 = shalt.err (!%p817_p9)
}
 0x25c   :  { %577 = dma.vmem_to_hbm [thread:$0]  %s575_s6, 128, %s995_s2, [#allocation4]  }
 0x25d   :  { %825 = dma.done.wait [#allocation4], 128  }
 0x25e   :  { %826 = vsyncadd [#allocation4], 4294967168 }
 0x25f   :  { %581 = vsyncpa [#allocation3], 1 }
 0x260   :  { %582 = vsyncpa [#allocation6], 1 }
 0x261   :  { %583 = vsyncpa [#allocation4], 1 }

</bundles_post_ra>
